<compile_context>
chip_gen: v7x
topology: tpu7x:2x2x1
jax: 0.10.0
libtpu: 0.0.40
codegen_flags: <defaults>
</compile_context>

<pallas_src>
import functools
import math

import jax
import jax.numpy as jnp
from jax.experimental import pallas as pl
from jax.experimental.pallas import tpu as pltpu


def _pick_tile(dim, target, align):
    """Largest tile <= target that is a multiple of `align` and divides `dim`.
    Falls back to the full dimension (always a legal block)."""
    if dim <= target:
        return dim
    t = (target // align) * align
    while t >= align:
        if dim % t == 0:
            return t
        t -= align
    return dim


def _vmem_limit(block_bytes):
    """vmem_limit_bytes derived from the block working set (+8 MiB headroom),
    floored at the 32 MiB scoped default and capped at v7x's 64 MiB."""
    return int(min(max(block_bytes + (8 << 20), 32 << 20), 64 << 20))


# ---------------------------------------------------------------------------
# Kernel 1: fused Q/K/V projection, resident weights.
#   x_stack [3, M, K] @ w_stack [3, K, N] + b_stack [3, 1, N] -> [3, M, N]
#   (slot 0/1/2 = q/k/v; the 1/sqrt(d_k) scale is pre-folded into slot 0).
# ---------------------------------------------------------------------------
def _qkv_proj_resident_kernel(x_ref, w_ref, b_ref, o_ref):
    o_ref[0] = (jnp.dot(x_ref[0], w_ref[0], preferred_element_type=jnp.float32)
                + b_ref[0]).astype(o_ref.dtype)


def _qkv_proj_tiled_kernel(x_ref, w_ref, b_ref, o_ref, acc_ref):
    @pl.when(pl.program_id(3) == 0)
    def _():
        acc_ref[...] = jnp.zeros_like(acc_ref)

    acc_ref[...] += jnp.dot(x_ref[0], w_ref[0],
                            preferred_element_type=jnp.float32)

    @pl.when(pl.program_id(3) == pl.num_programs(3) - 1)
    def _():
        o_ref[0] = (acc_ref[...] + b_ref[0]).astype(o_ref.dtype)


def fused_qkv_projection(x_stack, w_stack, b_stack, *,
                         compute_dtype=jnp.bfloat16,
                         tm_target=512, tn_target=512, tk_target=512):
    _, M, K = x_stack.shape
    N = w_stack.shape[-1]
    it = jnp.dtype(compute_dtype).itemsize
    tm = _pick_tile(M, tm_target, 8)

    # Resident-weight path: whole (K, N) weight held in VMEM, no reduction
    # grid axis, no accumulator, no per-k control flow (review item).
    if 2 * K * N * it <= (24 << 20):
        block_bytes = (2 * K * N * it + 2 * tm * K * it + 2 * tm * N * it
                       + 2 * N * 4)
        return pl.pallas_call(
            _qkv_proj_resident_kernel,
            out_shape=jax.ShapeDtypeStruct((3, M, N), compute_dtype),
            grid=(3, M // tm),
            in_specs=[
                pl.BlockSpec((1, tm, K), lambda s, i: (s, i, 0)),
                pl.BlockSpec((1, K, N), lambda s, i: (s, 0, 0)),
                pl.BlockSpec((1, 1, N), lambda s, i: (s, 0, 0)),
            ],
            out_specs=pl.BlockSpec((1, tm, N), lambda s, i: (s, i, 0)),
            compiler_params=pltpu.CompilerParams(
                dimension_semantics=("parallel", "parallel"),
                vmem_limit_bytes=_vmem_limit(block_bytes),
            ),
        )(x_stack, w_stack, b_stack)

    # Fallback for very large d_model: tiled reduction over K.
    tn = _pick_tile(N, tn_target, 128)
    tk = _pick_tile(K, tk_target, 128)
    block_bytes = (2 * tm * tk * it + 2 * tk * tn * it + 2 * tm * tn * it
                   + tm * tn * 4 + 2 * tn * 4)
    return pl.pallas_call(
        _qkv_proj_tiled_kernel,
        out_shape=jax.ShapeDtypeStruct((3, M, N), compute_dtype),
        grid=(3, M // tm, N // tn, K // tk),
        in_specs=[
            pl.BlockSpec((1, tm, tk), lambda s, i, j, k: (s, i, k)),
            pl.BlockSpec((1, tk, tn), lambda s, i, j, k: (s, k, j)),
            pl.BlockSpec((1, 1, tn), lambda s, i, j, k: (s, 0, j)),
        ],
        out_specs=pl.BlockSpec((1, tm, tn), lambda s, i, j, k: (s, i, j)),
        scratch_shapes=[pltpu.VMEM((tm, tn), jnp.float32)],
        compiler_params=pltpu.CompilerParams(
            dimension_semantics=("parallel", "parallel", "parallel", "arbitrary"),
            vmem_limit_bytes=_vmem_limit(block_bytes),
        ),
    )(x_stack, w_stack, b_stack)


# ---------------------------------------------------------------------------
# Kernel 2: per-head attention with the output projection fused in.
#   Grid (B, S//tq, H), head axis last (reduction for the fused out-proj).
#   Writes: out [B, S, D] f32 (lane-dense) and attn [B, H, S, S] bf16.
# ---------------------------------------------------------------------------
def _attn_outproj_kernel(q_ref, kt_ref, v_ref, wo_ref, bo_ref,
                         out_ref, attn_ref, acc_ref):
    h = pl.program_id(2)

    @pl.when(h == 0)
    def _():
        acc_ref[...] = jnp.zeros_like(acc_ref)

    q = q_ref[0, 0]       # (tq, d_k) bf16; 1/sqrt(d_k) pre-folded into Wq/bq
    kt = kt_ref[0, 0]     # (d_k, S)  bf16; pre-transposed -> plain NN matmul
    v = v_ref[0, 0]       # (S, d_k)  bf16

    scores = jnp.dot(q, kt, preferred_element_type=jnp.float32)        # (tq, S)
    m = jnp.max(scores, axis=-1, keepdims=True)
    p = jnp.exp(scores - m)                                            # f32
    inv_l = pl.reciprocal(jnp.sum(p, axis=-1, keepdims=True), approx=True)
    attn = p * inv_l
    attn_ref[0, 0] = attn.astype(attn_ref.dtype)                       # bf16 store

    ctx = jnp.dot(attn.astype(v.dtype), v,
                  preferred_element_type=jnp.float32)                  # (tq, d_k)
    # Fused output projection: concat_h(ctx_h) @ Wo == sum_h ctx_h @ Wo[h].
    acc_ref[...] += jnp.dot(ctx.astype(wo_ref.dtype), wo_ref[0],
                            preferred_element_type=jnp.float32)

    @pl.when(h == pl.num_programs(2) - 1)
    def _():
        out_ref[0] = (acc_ref[...] + bo_ref[...]).astype(out_ref.dtype)


def attention_output_projection(q, k_t, v, wo_heads, bo, *, tq_target=256,
                                attn_dtype=jnp.bfloat16, out_dtype=jnp.float32):
    """q, v: [B, H, S, d_k]; k_t: [B, H, d_k, S]; wo_heads: [H, d_k, D];
    bo: [1, D].  Returns (out [B,S,D] f32, attn [B,H,S,S] bf16)."""
    B, H, S, d_k = q.shape
    D = wo_heads.shape[-1]
    tq = _pick_tile(S, tq_target, 8)
    it = jnp.dtype(q.dtype).itemsize
    block_bytes = (2 * tq * d_k * it + 2 * d_k * S * it + 2 * S * d_k * it
                   + 2 * d_k * D * it
                   + 2 * tq * S * jnp.dtype(attn_dtype).itemsize
                   + 2 * tq * D * jnp.dtype(out_dtype).itemsize
                   + tq * D * 4 + 2 * D * 4)

    return pl.pallas_call(
        _attn_outproj_kernel,
        out_shape=(
            jax.ShapeDtypeStruct((B, S, D), out_dtype),
            jax.ShapeDtypeStruct((B, H, S, S), attn_dtype),
        ),
        grid=(B, S // tq, H),
        in_specs=[
            pl.BlockSpec((1, 1, tq, d_k), lambda b, qi, h: (b, h, qi, 0)),
            pl.BlockSpec((1, 1, d_k, S), lambda b, qi, h: (b, h, 0, 0)),
            pl.BlockSpec((1, 1, S, d_k), lambda b, qi, h: (b, h, 0, 0)),
            pl.BlockSpec((1, d_k, D), lambda b, qi, h: (h, 0, 0)),
            pl.BlockSpec((1, D), lambda b, qi, h: (0, 0)),
        ],
        out_specs=(
            pl.BlockSpec((1, tq, D), lambda b, qi, h: (b, qi, 0)),
            pl.BlockSpec((1, 1, tq, S), lambda b, qi, h: (b, h, qi, 0)),
        ),
        scratch_shapes=[pltpu.VMEM((tq, D), jnp.float32)],
        compiler_params=pltpu.CompilerParams(
            dimension_semantics=("parallel", "parallel", "arbitrary"),
            vmem_limit_bytes=_vmem_limit(block_bytes),
        ),
    )(q, k_t, v, wo_heads, bo)


# ---------------------------------------------------------------------------
# Parameter prep (one-time) + full module forward
# ---------------------------------------------------------------------------
def prepare_params(params, num_heads, compute_dtype=jnp.bfloat16):
    """Hoisted out of the forward pass: fold 1/sqrt(d_k) into the q projection,
    cast MXU operands to bf16, and pre-split Wo by head."""
    D = params["q_w"].shape[0]
    d_k = D // num_heads
    scale = 1.0 / math.sqrt(d_k)
    return {
        "w_stack": jnp.stack([params["q_w"] * scale, params["k_w"],
                              params["v_w"]]).astype(compute_dtype),
        "b_stack": jnp.stack([params["q_b"] * scale, params["k_b"],
                              params["v_b"]]).astype(jnp.float32),
        "wo_heads": params["o_w"].reshape(num_heads, d_k, D).astype(compute_dtype),
        "o_b": params["o_b"].astype(jnp.float32),
    }


@functools.partial(jax.jit, static_argnames=("num_heads", "compute_dtype"))
def flexible_mha_forward(Q, K, V, prepared, num_heads,
                         compute_dtype=jnp.bfloat16):
    B, S, D = Q.shape
    d_k = D // num_heads
    cd = compute_dtype
    x_stack = jnp.stack([Q.astype(cd), K.astype(cd), V.astype(cd)]
                        ).reshape(3, B * S, D)
    qkv = fused_qkv_projection(x_stack, prepared["w_stack"],
                               prepared["b_stack"], compute_dtype=cd)
    # Head split / K pre-transpose: one-time layout plumbing fused by XLA.
    qkv = qkv.reshape(3, B, S, num_heads, d_k)
    q = qkv[0].transpose(0, 2, 1, 3)      # [B, H, S, d_k]
    k_t = qkv[1].transpose(0, 2, 3, 1)    # [B, H, d_k, S]
    v = qkv[2].transpose(0, 2, 1, 3)      # [B, H, S, d_k]
    out, attn = attention_output_projection(q, k_t, v, prepared["wo_heads"],
                                            prepared["o_b"])
    return out, attn


def init_params(key, d_model):
    """Deterministic synthetic weights. Stored as [in, out] (= torch W^T)."""
    keys = jax.random.split(key, 8)
    scale = 1.0 / math.sqrt(d_model)
    params = {}
    for i, name in enumerate(["q", "k", "v", "o"]):
        params[f"{name}_w"] = scale * jax.random.normal(
            keys[2 * i], (d_model, d_model), dtype=jnp.float32)
        params[f"{name}_b"] = scale * jax.random.normal(
            keys[2 * i + 1], (1, d_model), dtype=jnp.float32)
    return params


if __name__ == "__main__":
    # Small shapes consistent with the module: batch=2, seq=8, d_model=32, heads=4
    B, S, D, H = 2, 8, 32, 4
    key = jax.random.PRNGKey(0)
    kq, kk, kv, kp = jax.random.split(key, 4)
    Q = jax.random.normal(kq, (B, S, D), dtype=jnp.float32)
    K = jax.random.normal(kk, (B, S, D), dtype=jnp.float32)
    V = jax.random.normal(kv, (B, S, D), dtype=jnp.float32)
    params = init_params(kp, D)
    prepared = prepare_params(params, num_heads=H)

    out, attn = flexible_mha_forward(Q, K, V, prepared, num_heads=H)
    jax.block_until_ready((out, attn))
    assert out.shape == (B, S, D) and attn.shape == (B, H, S, S)

    # Pure-JAX f32 reference (same math as the PyTorch module).
    def ref(Q, K, V, p):
        d_k = D // H

        def proj(x, n):
            y = x.reshape(B * S, D) @ p[f"{n}_w"] + p[f"{n}_b"]
            return y.reshape(B, S, H, d_k).transpose(0, 2, 1, 3)

        q, k, v = proj(Q, "q"), proj(K, "k"), proj(V, "v")
        s = jnp.einsum("bhqd,bhkd->bhqk", q, k) / math.sqrt(d_k)
        a = jax.nn.softmax(s, axis=-1)
        c = jnp.einsum("bhqk,bhkd->bhqd", a, v)
        c = c.transpose(0, 2, 1, 3).reshape(B * S, D)
        return (c @ p["o_w"] + p["o_b"]).reshape(B, S, D), a

    out_ref, attn_ref = ref(Q, K, V, params)
    # Tolerances account for bf16 MXU operands + bf16 attention-weight storage
    # (accumulation is f32; softmax statistics are f32).
    assert jnp.allclose(attn.astype(jnp.float32), attn_ref, atol=5e-2), \
        "attention weights mismatch"
    assert jnp.allclose(out, out_ref, atol=2e-1, rtol=2e-2), "output mismatch"
    print("KERNEL_OK")
</pallas_src>

<mosaic_0001>
module attributes {stable_mosaic.version = 11 : i64} {
  func.func @_qkv_proj_resident_kernel(%arg0: i32, %arg1: i32, %arg2: memref<1x16x32xbf16, #tpu.memory_space<vmem>>, %arg3: memref<1x32x32xbf16, #tpu.memory_space<vmem>>, %arg4: memref<1x1x32xf32, #tpu.memory_space<vmem>>, %arg5: memref<1x16x32xbf16, #tpu.memory_space<vmem>>) attributes {dimension_semantics = [#tpu.dimension_semantics<parallel>, #tpu.dimension_semantics<parallel>], iteration_bounds = array<i64: 3, 1>, scalar_prefetch = 0 : i64, scratch_operands = 0 : i64, tpu.core_type = #tpu.core_type<tc>, window_params = [{transform_indices = @transform_0, window_bounds = array<i64: 1, 16, 32>}, {transform_indices = @transform_1, window_bounds = array<i64: 1, 32, 32>}, {transform_indices = @transform_2, window_bounds = array<i64: 1, 1, 32>}, {transform_indices = @transform_3, window_bounds = array<i64: 1, 16, 32>}]} {
    %c0 = arith.constant 0 : index
    %c0_0 = arith.constant 0 : index
    %c0_1 = arith.constant 0 : index
    %0 = vector.load %arg2[%c0, %c0_0, %c0_1] : memref<1x16x32xbf16, #tpu.memory_space<vmem>>, vector<1x16x32xbf16>
    %1 = vector.shape_cast %0 : vector<1x16x32xbf16> to vector<16x32xbf16>
    %c0_2 = arith.constant 0 : index
    %c0_3 = arith.constant 0 : index
    %c0_4 = arith.constant 0 : index
    %2 = vector.load %arg3[%c0_2, %c0_3, %c0_4] : memref<1x32x32xbf16, #tpu.memory_space<vmem>>, vector<1x32x32xbf16>
    %3 = vector.shape_cast %2 : vector<1x32x32xbf16> to vector<32x32xbf16>
    %cst = arith.constant dense<0.000000e+00> : vector<16x32xf32>
    %4 = tpu.matmul %1, %3, %cst {dimension_numbers = #tpu.dot_dimension_numbers<[1], [0], [0], [1], [0, 0, 1, 1], [], []>} : vector<16x32xbf16>, vector<32x32xbf16>, vector<16x32xf32> -> vector<16x32xf32>
    %c0_5 = arith.constant 0 : index
    %c0_6 = arith.constant 0 : index
    %c0_7 = arith.constant 0 : index
    %5 = vector.load %arg4[%c0_5, %c0_6, %c0_7] : memref<1x1x32xf32, #tpu.memory_space<vmem>>, vector<1x1x32xf32>
    %6 = vector.shape_cast %5 : vector<1x1x32xf32> to vector<1x32xf32>
    %7 = vector.broadcast %6 : vector<1x32xf32> to vector<16x32xf32>
    %8 = arith.addf %4, %7 : vector<16x32xf32>
    %9 = arith.truncf %8 : vector<16x32xf32> to vector<16x32xbf16>
    %c0_8 = arith.constant 0 : index
    %c0_9 = arith.constant 0 : index
    %c0_10 = arith.constant 0 : index
    %10 = vector.load %arg5[%c0_8, %c0_9, %c0_10] : memref<1x16x32xbf16, #tpu.memory_space<vmem>>, vector<1x16x32xbf16>
    %11 = vector.shape_cast %10 : vector<1x16x32xbf16> to vector<16x32xbf16>
    %12 = vector.shape_cast %9 : vector<16x32xbf16> to vector<1x16x32xbf16>
    tpu.vector_store %arg5[%c0_8, %c0_9, %c0_10], %12 {strides = array<i32>} : memref<1x16x32xbf16, #tpu.memory_space<vmem>>, vector<1x16x32xbf16>,
    return
  }
  func.func @transform_0(%arg0: i32, %arg1: i32) -> (i32, i32, i32) {
    %c0_i32 = arith.constant 0 : i32
    %c0_i32_0 = arith.constant 0 : i32
    return %arg0, %arg1, %c0_i32 : i32, i32, i32
  }
  func.func @transform_1(%arg0: i32, %arg1: i32) -> (i32, i32, i32) {
    %c0_i32 = arith.constant 0 : i32
    %c0_i32_0 = arith.constant 0 : i32
    %c0_i32_1 = arith.constant 0 : i32
    return %arg0, %c0_i32, %c0_i32_0 : i32, i32, i32
  }
  func.func @transform_2(%arg0: i32, %arg1: i32) -> (i32, i32, i32) {
    %c0_i32 = arith.constant 0 : i32
    %c0_i32_0 = arith.constant 0 : i32
    %c0_i32_1 = arith.constant 0 : i32
    return %arg0, %c0_i32, %c0_i32_0 : i32, i32, i32
  }
  func.func @transform_3(%arg0: i32, %arg1: i32) -> (i32, i32, i32) {
    %c0_i32 = arith.constant 0 : i32
    %c0_i32_0 = arith.constant 0 : i32
    return %arg0, %arg1, %c0_i32 : i32, i32, i32
  }
}

module attributes {stable_mosaic.version = 11 : i64} {
  func.func @_attn_outproj_kernel(%arg0: i32, %arg1: i32, %arg2: i32, %arg3: memref<1x1x8x8xbf16, #tpu.memory_space<vmem>>, %arg4: memref<1x1x8x8xbf16, #tpu.memory_space<vmem>>, %arg5: memref<1x1x8x8xbf16, #tpu.memory_space<vmem>>, %arg6: memref<1x8x32xbf16, #tpu.memory_space<vmem>>, %arg7: memref<1x32xf32, #tpu.memory_space<vmem>>, %arg8: memref<1x8x32xf32, #tpu.memory_space<vmem>>, %arg9: memref<1x1x8x8xbf16, #tpu.memory_space<vmem>>, %arg10: memref<8x32xf32, #tpu.memory_space<vmem>>) attributes {dimension_semantics = [#tpu.dimension_semantics<parallel>, #tpu.dimension_semantics<parallel>, #tpu.dimension_semantics<arbitrary>], iteration_bounds = array<i64: 2, 1, 4>, scalar_prefetch = 0 : i64, scratch_operands = 1 : i64, tpu.core_type = #tpu.core_type<tc>, window_params = [{transform_indices = @transform_0, window_bounds = array<i64: 1, 1, 8, 8>}, {transform_indices = @transform_1, window_bounds = array<i64: 1, 1, 8, 8>}, {transform_indices = @transform_2, window_bounds = array<i64: 1, 1, 8, 8>}, {transform_indices = @transform_3, window_bounds = array<i64: 1, 8, 32>}, {pipeline_mode = #tpu.pipeline_mode<synchronous>, transform_indices = @transform_4, window_bounds = array<i64: 1, 32>}, {transform_indices = @transform_5, window_bounds = array<i64: 1, 8, 32>}, {transform_indices = @transform_6, window_bounds = array<i64: 1, 1, 8, 8>}]} {
    %c0_i32 = arith.constant 0 : i32
    %0 = arith.cmpi eq, %arg2, %c0_i32 : i32
    %1 = arith.extui %0 : i1 to i32
    %c0_i32_0 = arith.constant 0 : i32
    %2 = arith.cmpi ne, %1, %c0_i32_0 : i32
    scf.if %2 {
      %cst_28 = arith.constant 0.000000e+00 : f32
      %36 = vector.broadcast %cst_28 : f32 to vector<8x32xf32>
      %c0_29 = arith.constant 0 : index
      %c0_30 = arith.constant 0 : index
      %37 = vector.load %arg10[%c0_29, %c0_30] : memref<8x32xf32, #tpu.memory_space<vmem>>, vector<8x32xf32>
      tpu.vector_store %arg10[%c0_29, %c0_30], %36 {strides = array<i32>} : memref<8x32xf32, #tpu.memory_space<vmem>>, vector<8x32xf32>,
    } else {
    }
    %c0 = arith.constant 0 : index
    %c0_1 = arith.constant 0 : index
    %c0_2 = arith.constant 0 : index
    %c0_3 = arith.constant 0 : index
    %3 = vector.load %arg3[%c0, %c0_1, %c0_2, %c0_3] : memref<1x1x8x8xbf16, #tpu.memory_space<vmem>>, vector<1x1x8x8xbf16>
    %4 = vector.shape_cast %3 : vector<1x1x8x8xbf16> to vector<8x8xbf16>
    %c0_4 = arith.constant 0 : index
    %c0_5 = arith.constant 0 : index
    %c0_6 = arith.constant 0 : index
    %c0_7 = arith.constant 0 : index
    %5 = vector.load %arg4[%c0_4, %c0_5, %c0_6, %c0_7] : memref<1x1x8x8xbf16, #tpu.memory_space<vmem>>, vector<1x1x8x8xbf16>
    %6 = vector.shape_cast %5 : vector<1x1x8x8xbf16> to vector<8x8xbf16>
    %c0_8 = arith.constant 0 : index
    %c0_9 = arith.constant 0 : index
    %c0_10 = arith.constant 0 : index
    %c0_11 = arith.constant 0 : index
    %7 = vector.load %arg5[%c0_8, %c0_9, %c0_10, %c0_11] : memref<1x1x8x8xbf16, #tpu.memory_space<vmem>>, vector<1x1x8x8xbf16>
    %8 = vector.shape_cast %7 : vector<1x1x8x8xbf16> to vector<8x8xbf16>
    %cst = arith.constant dense<0.000000e+00> : vector<8x8xf32>
    %9 = tpu.matmul %4, %6, %cst {dimension_numbers = #tpu.dot_dimension_numbers<[1], [0], [0], [1], [0, 0, 1, 1], [], []>} : vector<8x8xbf16>, vector<8x8xbf16>, vector<8x8xf32> -> vector<8x8xf32>
    %cst_12 = arith.constant dense<0xFF800000> : vector<8xf32>
    %10 = vector.multi_reduction <maximumf>, %9, %cst_12 [1] : vector<8x8xf32> to vector<8xf32>
    %11 = vector.shape_cast %10 : vector<8xf32> to vector<8x1xf32>
    %12 = vector.broadcast %11 : vector<8x1xf32> to vector<8x8xf32>
    %13 = arith.subf %9, %12 : vector<8x8xf32>
    %14 = math.exp %13 : vector<8x8xf32>
    %cst_13 = arith.constant dense<0.000000e+00> : vector<8xf32>
    %15 = vector.multi_reduction <add>, %14, %cst_13 [1] : vector<8x8xf32> to vector<8xf32>
    %16 = vector.shape_cast %15 : vector<8xf32> to vector<8x1xf32>
    %17 = tpu.reciprocal %16 {approx = true} : vector<8x1xf32> -> vector<8x1xf32>
    %18 = vector.broadcast %17 : vector<8x1xf32> to vector<8x8xf32>
    %19 = arith.mulf %14, %18 : vector<8x8xf32>
    %20 = arith.truncf %19 : vector<8x8xf32> to vector<8x8xbf16>
    %c0_14 = arith.constant 0 : index
    %c0_15 = arith.constant 0 : index
    %c0_16 = arith.constant 0 : index
    %c0_17 = arith.constant 0 : index
    %21 = vector.load %arg9[%c0_14, %c0_15, %c0_16, %c0_17] : memref<1x1x8x8xbf16, #tpu.memory_space<vmem>>, vector<1x1x8x8xbf16>
    %22 = vector.shape_cast %21 : vector<1x1x8x8xbf16> to vector<8x8xbf16>
    %23 = vector.shape_cast %20 : vector<8x8xbf16> to vector<1x1x8x8xbf16>
    tpu.vector_store %arg9[%c0_14, %c0_15, %c0_16, %c0_17], %23 {strides = array<i32>} : memref<1x1x8x8xbf16, #tpu.memory_space<vmem>>, vector<1x1x8x8xbf16>,
    %24 = arith.truncf %19 : vector<8x8xf32> to vector<8x8xbf16>
    %cst_18 = arith.constant dense<0.000000e+00> : vector<8x8xf32>
    %25 = tpu.matmul %24, %8, %cst_18 {dimension_numbers = #tpu.dot_dimension_numbers<[1], [0], [0], [1], [0, 0, 1, 1], [], []>} : vector<8x8xbf16>, vector<8x8xbf16>, vector<8x8xf32> -> vector<8x8xf32>
    %c0_19 = arith.constant 0 : index
    %c0_20 = arith.constant 0 : index
    %26 = vector.load %arg10[%c0_19, %c0_20] : memref<8x32xf32, #tpu.memory_space<vmem>>, vector<8x32xf32>
    %27 = arith.truncf %25 : vector<8x8xf32> to vector<8x8xbf16>
    %c0_21 = arith.constant 0 : index
    %c0_22 = arith.constant 0 : index
    %c0_23 = arith.constant 0 : index
    %28 = vector.load %arg6[%c0_21, %c0_22, %c0_23] : memref<1x8x32xbf16, #tpu.memory_space<vmem>>, vector<1x8x32xbf16>
    %29 = vector.shape_cast %28 : vector<1x8x32xbf16> to vector<8x32xbf16>
    %cst_24 = arith.constant dense<0.000000e+00> : vector<8x32xf32>
    %30 = tpu.matmul %27, %29, %cst_24 {dimension_numbers = #tpu.dot_dimension_numbers<[1], [0], [0], [1], [0, 0, 1, 1], [], []>} : vector<8x8xbf16>, vector<8x32xbf16>, vector<8x32xf32> -> vector<8x32xf32>
    %31 = arith.addf %26, %30 : vector<8x32xf32>
    %c0_25 = arith.constant 0 : index
    %c0_26 = arith.constant 0 : index
    %32 = vector.load %arg10[%c0_25, %c0_26] : memref<8x32xf32, #tpu.memory_space<vmem>>, vector<8x32xf32>
    tpu.vector_store %arg10[%c0_25, %c0_26], %31 {strides = array<i32>} : memref<8x32xf32, #tpu.memory_space<vmem>>, vector<8x32xf32>,
    %c3_i32 = arith.constant 3 : i32
    %33 = arith.cmpi eq, %arg2, %c3_i32 : i32
    %34 = arith.extui %33 : i1 to i32
    %c0_i32_27 = arith.constant 0 : i32
    %35 = arith.cmpi ne, %34, %c0_i32_27 : i32
    scf.if %35 {
      %c0_28 = arith.constant 0 : index
      %c0_29 = arith.constant 0 : index
      %36 = vector.load %arg10[%c0_28, %c0_29] : memref<8x32xf32, #tpu.memory_space<vmem>>, vector<8x32xf32>
      %c0_30 = arith.constant 0 : index
      %c0_31 = arith.constant 0 : index
      %37 = vector.load %arg7[%c0_30, %c0_31] : memref<1x32xf32, #tpu.memory_space<vmem>>, vector<1x32xf32>
      %38 = vector.broadcast %37 : vector<1x32xf32> to vector<8x32xf32>
      %39 = arith.addf %36, %38 : vector<8x32xf32>
      %c0_32 = arith.constant 0 : index
      %c0_33 = arith.constant 0 : index
      %c0_34 = arith.constant 0 : index
      %40 = vector.load %arg8[%c0_32, %c0_33, %c0_34] : memref<1x8x32xf32, #tpu.memory_space<vmem>>, vector<1x8x32xf32>
      %41 = vector.shape_cast %40 : vector<1x8x32xf32> to vector<8x32xf32>
      %42 = vector.shape_cast %39 : vector<8x32xf32> to vector<1x8x32xf32>
      tpu.vector_store %arg8[%c0_32, %c0_33, %c0_34], %42 {strides = array<i32>} : memref<1x8x32xf32, #tpu.memory_space<vmem>>, vector<1x8x32xf32>,
    } else {
    }
    return
  }
  func.func @transform_0(%arg0: i32, %arg1: i32, %arg2: i32) -> (i32, i32, i32, i32) {
    %c0_i32 = arith.constant 0 : i32
    %c0_i32_0 = arith.constant 0 : i32
    return %arg0, %arg2, %arg1, %c0_i32 : i32, i32, i32, i32
  }
  func.func @transform_1(%arg0: i32, %arg1: i32, %arg2: i32) -> (i32, i32, i32, i32) {
    %c0_i32 = arith.constant 0 : i32
    %c0_i32_0 = arith.constant 0 : i32
    %c0_i32_1 = arith.constant 0 : i32
    return %arg0, %arg2, %c0_i32, %c0_i32_0 : i32, i32, i32, i32
  }
  func.func @transform_2(%arg0: i32, %arg1: i32, %arg2: i32) -> (i32, i32, i32, i32) {
    %c0_i32 = arith.constant 0 : i32
    %c0_i32_0 = arith.constant 0 : i32
    %c0_i32_1 = arith.constant 0 : i32
    return %arg0, %arg2, %c0_i32, %c0_i32_0 : i32, i32, i32, i32
  }
  func.func @transform_3(%arg0: i32, %arg1: i32, %arg2: i32) -> (i32, i32, i32) {
    %c0_i32 = arith.constant 0 : i32
    %c0_i32_0 = arith.constant 0 : i32
    %c0_i32_1 = arith.constant 0 : i32
    return %arg2, %c0_i32, %c0_i32_0 : i32, i32, i32
  }
  func.func @transform_4(%arg0: i32, %arg1: i32, %arg2: i32) -> (i32, i32) {
    %c0_i32 = arith.constant 0 : i32
    %c0_i32_0 = arith.constant 0 : i32
    %c0_i32_1 = arith.constant 0 : i32
    return %c0_i32, %c0_i32_0 : i32, i32
  }
  func.func @transform_5(%arg0: i32, %arg1: i32, %arg2: i32) -> (i32, i32, i32) {
    %c0_i32 = arith.constant 0 : i32
    %c0_i32_0 = arith.constant 0 : i32
    return %arg0, %arg1, %c0_i32 : i32, i32, i32
  }
  func.func @transform_6(%arg0: i32, %arg1: i32, %arg2: i32) -> (i32, i32, i32, i32) {
    %c0_i32 = arith.constant 0 : i32
    %c0_i32_0 = arith.constant 0 : i32
    return %arg0, %arg2, %arg1, %c0_i32 : i32, i32, i32, i32
  }
}

</mosaic_0001>

<bundles_post_ra>
// kernel: squeeze.3
= control target key start
LH: loop header
LB: loop body
LE: loop exit
PB: predicated region body
PF: predicated region fallthrough
CT: control target
= control target key end

     0   :  { %vm34_vm0 = vcmask 64512   ;;  %s261_s8 = smov 104   ;;  %s262_s9 = smov 112   ;;  %v263_v16 = vmov 0.0   ;;  %s341_s0 = inlined_call_operand.vmem [shape: bf16[1,16,32], index: 0, kind: input, shape index: {}]   ;;  %s342_s1 = inlined_call_operand.vmem [shape: bf16[2,8,4,8], index: 1, kind: output, shape index: {}]  }
   0x1   :  { %v238_v0 = vld [vmem:[%s341_s0] sm:$0xff]   ;;  %s260_s0 = smov 120  }
   0x2   :  { %v239_v1 = vunpack.c.l.bf16 %v238_v0  ;;  %v240_v2 = vunpack.c.h.bf16 %v238_v0 }
   0x4   :  { %41 = vst.msk [vmem:[#allocation0 + $0x40] ss:$8 sm:$0xf] %vm34_vm0, %v240_v2   ;;  %43 = vst.msk [vmem:[#allocation0 + $0x40] ss:$8 sm:$0xf0] %vm34_vm0, %v240_v2   ;;  %v245_v3 = vpack.i.bf16 %v240_v2, %v239_v1 }
   0x5   :  { %35 = vst.msk [vmem:[#allocation0] ss:$8 sm:$0xf] %vm34_vm0, %v239_v1   ;;  %36 = vst.msk [vmem:[#allocation0] ss:$8 sm:$0xf0] %vm34_vm0, %v239_v1  }
   0x6   :  { %246 = vrot.lane.b32.xlu0 %v245_v3, %s260_s0  ;;  %256 = vrot.lane.b32.xlu1 %v245_v3, %s261_s8 }
   0xa   :  { %251 = vrot.lane.b32.xlu0 %v245_v3, %s262_s9 }
  0x78   :  { %v247_v4 = vpop.permute.xlu0 %246  ;;  %v257_v5 = vpop.permute.xlu1 %256 }
  0x79   :  { %v249_v6 = vunpack.i.h.bf16 %v247_v4  ;;  %v248_v7 = vunpack.i.l.bf16 %v247_v4  ;;  %v259_v8 = vunpack.i.h.bf16 %v257_v5  ;;  %v258_v9 = vunpack.i.l.bf16 %v257_v5 }
  0x7b   :  { %58 = vst.msk [vmem:[#allocation0 + $0x41] ss:$8 sm:$0xf] %vm34_vm0, %v249_v6   ;;  %60 = vst.msk [vmem:[#allocation0 + $0x41] ss:$8 sm:$0xf0] %vm34_vm0, %v249_v6  }
  0x7c   :  { %49 = vst.msk [vmem:[#allocation0 + $0x1] ss:$8 sm:$0xf] %vm34_vm0, %v248_v7   ;;  %51 = vst.msk [vmem:[#allocation0 + $0x1] ss:$8 sm:$0xf0] %vm34_vm0, %v248_v7   ;;  %v252_v10 = vpop.permute.xlu0 %251 }
  0x7d   :  { %92 = vst.msk [vmem:[#allocation0 + $0x43] ss:$8 sm:$0xf] %vm34_vm0, %v259_v8   ;;  %94 = vst.msk [vmem:[#allocation0 + $0x43] ss:$8 sm:$0xf0] %vm34_vm0, %v259_v8   ;;  %v254_v11 = vunpack.i.h.bf16 %v252_v10  ;;  %v253_v12 = vunpack.i.l.bf16 %v252_v10 }
  0x7e   :  { %83 = vst.msk [vmem:[#allocation0 + $0x3] ss:$8 sm:$0xf] %vm34_vm0, %v258_v9   ;;  %85 = vst.msk [vmem:[#allocation0 + $0x3] ss:$8 sm:$0xf0] %vm34_vm0, %v258_v9  }
  0x7f   :  { %75 = vst.msk [vmem:[#allocation0 + $0x42] ss:$8 sm:$0xf] %vm34_vm0, %v254_v11   ;;  %77 = vst.msk [vmem:[#allocation0 + $0x42] ss:$8 sm:$0xf0] %vm34_vm0, %v254_v11  }
  0x80   :  { %66 = vst.msk [vmem:[#allocation0 + $0x2] ss:$8 sm:$0xf] %vm34_vm0, %v253_v12   ;;  %68 = vst.msk [vmem:[#allocation0 + $0x2] ss:$8 sm:$0xf0] %vm34_vm0, %v253_v12  }
  0x86   :  { %v152_v28 = vld [vmem:[#allocation0 + $0x40] sm:$0xf]  ;;  %v159_v32 = vld [vmem:[#allocation0 + $0x48] sm:$0xf]  ;;  %v166_v33 = vld [vmem:[#allocation0 + $0x50] sm:$0xf] }
  0x87   :  { %v124_v13 = vld [vmem:[#allocation0 + $0x20] sm:$0xf]  ;;  %v131_v14 = vld [vmem:[#allocation0 + $0x28] sm:$0xf]  ;;  %v138_v15 = vld [vmem:[#allocation0 + $0x30] sm:$0xf]  ;;  %v153_v31 = vpack.c.bf16 %v263_v16, %v152_v28  ;;  %v160_v35 = vpack.c.bf16 %v263_v16, %v159_v32  ;;  %v167_v36 = vpack.c.bf16 %v263_v16, %v166_v33 }
  0x88   :  { %v125_v17 = vpack.c.bf16 %v263_v16, %v124_v13  ;;  %v132_v18 = vpack.c.bf16 %v263_v16, %v131_v14  ;;  %v139_v19 = vpack.c.bf16 %v263_v16, %v138_v15  ;;  %v145_v20 = vld [vmem:[#allocation0 + $0x38] sm:$0xf]  ;;  %v99_v21 = vld [vmem:[#allocation0] sm:$0xf]  ;;  %v104_v22 = vld [vmem:[#allocation0 + $0x8] sm:$0xf] }
  0x89   :  { %v146_v23 = vpack.c.bf16 %v263_v16, %v145_v20  ;;  %v100_v24 = vpack.c.bf16 %v263_v16, %v99_v21  ;;  %v105_v25 = vpack.c.bf16 %v263_v16, %v104_v22  ;;  %v110_v26 = vld [vmem:[#allocation0 + $0x10] sm:$0xf]  ;;  %v117_v27 = vld [vmem:[#allocation0 + $0x18] sm:$0xf]  ;;  %v180_v38 = vld [vmem:[#allocation0 + $0x60] sm:$0xf] }
  0x8a   :  { %225 = vst [vmem:[%s342_s1 + $0x8] sm:$0x3] %v125_v17  ;;  %226 = vst [vmem:[%s342_s1 + $0xa] sm:$0x3] %v132_v18  ;;  %v111_v29 = vpack.c.bf16 %v263_v16, %v110_v26  ;;  %v118_v30 = vpack.c.bf16 %v263_v16, %v117_v27  ;;  %v173_v34 = vld [vmem:[#allocation0 + $0x58] sm:$0xf]  ;;  %v181_v41 = vpack.c.bf16 %v263_v16, %v180_v38 }
  0x8b   :  { %227 = vst [vmem:[%s342_s1 + $0xc] sm:$0x3] %v139_v19  ;;  %228 = vst [vmem:[%s342_s1 + $0xe] sm:$0x3] %v146_v23  ;;  %v174_v37 = vpack.c.bf16 %v263_v16, %v173_v34  ;;  %v187_v39 = vld [vmem:[#allocation0 + $0x68] sm:$0xf] }
  0x8c   :  { %102 = vst [vmem:[%s342_s1] sm:$0x3] %v100_v24  ;;  %222 = vst [vmem:[%s342_s1 + $0x2] sm:$0x3] %v105_v25  ;;  %v194_v40 = vld [vmem:[#allocation0 + $0x70] sm:$0xf]  ;;  %v188_v42 = vpack.c.bf16 %v263_v16, %v187_v39 }
  0x8d   :  { %223 = vst [vmem:[%s342_s1 + $0x4] sm:$0x3] %v111_v29  ;;  %224 = vst [vmem:[%s342_s1 + $0x6] sm:$0x3] %v118_v30  ;;  %v195_v43 = vpack.c.bf16 %v263_v16, %v194_v40  ;;  %v201_v44 = vld [vmem:[#allocation0 + $0x78] sm:$0xf] }
  0x8e   :  { %229 = vst [vmem:[%s342_s1 + $0x10] sm:$0x3] %v153_v31  ;;  %230 = vst [vmem:[%s342_s1 + $0x12] sm:$0x3] %v160_v35  ;;  %v202_v45 = vpack.c.bf16 %v263_v16, %v201_v44 }
  0x8f   :  { %231 = vst [vmem:[%s342_s1 + $0x14] sm:$0x3] %v167_v36  ;;  %232 = vst [vmem:[%s342_s1 + $0x16] sm:$0x3] %v174_v37 }
  0x90   :  { %233 = vst [vmem:[%s342_s1 + $0x18] sm:$0x3] %v181_v41  ;;  %234 = vst [vmem:[%s342_s1 + $0x1a] sm:$0x3] %v188_v42 }
  0x91   :  { %235 = vst [vmem:[%s342_s1 + $0x1c] sm:$0x3] %v195_v43  ;;  %236 = vst [vmem:[%s342_s1 + $0x1e] sm:$0x3] %v202_v45 }

// kernel: flexible_mha_forward.2
= control target key start
LH: loop header
LB: loop body
LE: loop exit
PB: predicated region body
PF: predicated region fallthrough
CT: control target
= control target key end

     0   :  { %s550_s12 = smov 0   ;;  %s552_s13 = smov 0   ;;  %s589_s0 = inlined_call_operand.vmem [shape: bf16[3,16,32], index: 0, kind: input, shape index: {}]   ;;  %s590_s1 = inlined_call_operand.vmem [shape: bf16[3,32,32], index: 1, kind: input, shape index: {}]   ;;  %s591_s2 = inlined_call_operand.vmem [shape: f32[3,1,32], index: 2, kind: input, shape index: {}]   ;;  %s592_s3 = inlined_call_operand.vmem [shape: bf16[3,16,32], index: 3, kind: output, shape index: {}]  }
   0x1   :  { %s554_s14 = smov 0  }
   0x2 LB: > { %s25_s15 = sadd.s32 1, %s522_s13  ;;  %p443_p0 = scmp.ge.s32.totalorder %s526_s14, 1  ;;  %s526_s14 = sphi %s554_s14, %s13_s14   ;;  %s522_s13 = sphi %s552_s13, %s594_s13   ;;  %s518_s12 = sphi %s550_s12, %s593_s12  }
   0x3   : > { %p27_p1 = scmp.ge.s32.totalorder %s25_s15, 3  ;;  %p176_p2 = scmp.lt.s32.totalorder %s526_s14, 4 }
   0x5   : > { %s596_s15 = smov (%p27_p1, %s25_s15), 0  ;;  %p177_p3 = pnand %p443_p0, %p176_p2 }
   0x6   : > { %p217_p4 = scmp.lt.s32.totalorder (!%p177_p3), %s518_s12, 2  ;;  %v528_v0 = vmov (!%p177_p3), 0.0   ;;  %vm529_vm0 = vmmov (!%p177_p3), 0   ;;  %vm275_vm1 = vcmask (!%p177_p3), 261120   ;;  %vm328_vm2 = vcmask (!%p177_p3), 257024  }
   0x7   : > { %180 = sbr.rel (%p177_p3) target bundleno = 244 (0xf4), region = 32  ;;  %467 = vmatprep.subr.bf16.mxu0 (!%p177_p3), %v528_v0  ;;  %471 = vmatprep.mubr.msk.bf16.mxu0 (!%p177_p3), %vm529_vm0, %v528_v0 }
   0xe   : > { %s598_s12 = smov (!%p217_p4, %s518_s12), 2 }
   0xf   : > { %s460_s16 = sshll.u32 %s598_s12, 4  ;;  %s459_s17 = sshll.u32 %s598_s12, 3 }
  0x10   : > { %s230_s20 = scalar_lea.vmem %s590_s1, %s460_s16  ;;  %s224_s23 = scalar_lea.vmem %s589_s0, %s459_s17 }
  0x11   : > { %v501_v1 = vld [vmem:[%s230_s20] sm:$0xff]   ;;  %v502_v2 = vld [vmem:[%s230_s20 + $0x8] sm:$0xff]   ;;  %s233_s26 = scalar_lea.vmem %s591_s2, %s598_s12  ;;  %s242_s29 = scalar_lea.vmem %s592_s3, %s459_s17 }
  0x12   : > { %468 = vmatpush3.bf16.msra.mxu0 %v501_v1  ;;  %v503_v3 = vld [vmem:[%s224_s23] sm:$0xff]  }
  0x13   : > { %469 = vmatprep.subr.bf16.mxu0 %v528_v0  ;;  %v450_v4 = vld [vmem:[%s233_s26] ss:$0 sm:$0xff] }
  0x16   : > { %470 = vmatpush3.bf16.msra.mxu0 %v502_v2 }
  0x19   : > { %472 = vmatmul.mubr.msk.bf16.vlgmr.msra.gmra.mrb[0].mxu0 %vm275_vm1, %v503_v3 }
  0xec   : > { %v313_v5 = vpop.f32.mrb[0].mxu0 }
  0xed   : > { %v314_v6 = vadd.f32 %v450_v4, %v313_v5  ;;  %v473_v7 = vpop.f32.mrb[1].mxu0 }
  0xee   : > { %v316_v8 = vpop.f32.mrb[2].mxu0 }
  0xef   : > { %v462_v9 = vpack.c.bf16 %v314_v6, %v314_v6  ;;  %v317_v10 = vadd.f32 %v450_v4, %v316_v8  ;;  %v474_v11 = vpop.f32.mrb[3].mxu0 }
  0xf1   : > { %329 = vst.msk [vmem:[%s242_s29] sm:$0xf] %vm328_vm2, %v462_v9  ;;  %v463_v12 = vpack.c.bf16 %v317_v10, %v317_v10 }
  0xf3   : > { %330 = vst.msk [vmem:[%s242_s29 + $0x4] sm:$0xf] %vm328_vm2, %v463_v12 }
  0xf4 PF: > { %s13_s14 = sadd.s32 1, %s526_s14   ;;  %s593_s12 = smov %s522_s13 }
  0xf5   : > { %p10_p5 = scmp.ge.s32.totalorder %s13_s14, 5   ;;  %s594_s13 = smov %s596_s15 }
  0xf7   :  { %12 = sbr.rel (!%p10_p5) target bundleno = 2 (0x2), region = 68 }

// kernel: flexible_mha_forward.3
= control target key start
LH: loop header
LB: loop body
LE: loop exit
PB: predicated region body
PF: predicated region fallthrough
CT: control target
= control target key end

     0   :  { %12 = vsyncpa [#allocation4], 0  ;;  %s1393_s0 = inlined_call_operand.vmem [shape: bf16[2,4,8,8], index: 0, kind: input, shape index: {}]   ;;  %s1394_s1 = inlined_call_operand.vmem [shape: bf16[2,4,8,8], index: 1, kind: input, shape index: {}]   ;;  %s1395_s2 = inlined_call_operand.vmem [shape: bf16[2,4,8,8], index: 2, kind: input, shape index: {}]   ;;  %s1396_s3 = inlined_call_operand.vmem [shape: bf16[4,8,32], index: 3, kind: input, shape index: {}]   ;;  %s1397_s4 = inlined_call_operand.vmem [shape: f32[1,32], index: 4, kind: input, shape index: {}]   ;;  %s1398_s5 = inlined_call_operand.hbm [shape: f32[2,8,32], index: 5, kind: output, shape index: {0}]   ;;  %s1399_s6 = inlined_call_operand.hbm [shape: bf16[2,4,8,8], index: 6, kind: output, shape index: {1}]  }
   0x1   :  { %14 = vsyncpa [#allocation4 + $0x1], 0 }
   0x2   :  { %15 = vsyncpa [#allocation6], 0 }
   0x3   :  { %17 = vsyncpa [#allocation6 + $0x1], 0  ;;  %s1123_s21 = smov 0   ;;  %s1125_s22 = smov 0  }
   0x4   :  { %s1127_s23 = smov 0   ;;  %s1129_s24 = smov 0  }
   0x5   :  { %s1131_s25 = smov 0   ;;  %s1133_s26 = smov 0  }
   0x6   :  { %s1135_s27 = smov 0   ;;  %s1137_s28 = smov 0  }
   0x7   :  { %s1139_s29 = smov 0   ;;  %s1141_s30 = smov 0  }
   0x8   :  { %s1143_s7 = smov 0  }
   0x9 LB: > { %1414 = sst [smem:[#allocation9_spill]] %s1041_s21  ;;  %s773_s8 = sadd.s32 4294967295, %s1081_s7   ;;  %s1081_s7 = sphi %s1143_s7, %s23_s7   ;;  %s1077_s30 = sphi %s1141_s30, %s1448_s30   ;;  %s1073_s29 = sphi %s1139_s29, %s1447_s29   ;;  %s1069_s28 = sphi %s1137_s28, %s1446_s28   ;;  %s1065_s27 = sphi %s1135_s27, %s1445_s27   ;;  %s1061_s26 = sphi %s1133_s26, %s1444_s26   ;;  %s1057_s25 = sphi %s1131_s25, %s1452_s25   ;;  %s1053_s24 = sphi %s1129_s24, %s1451_s24   ;;  %s1049_s23 = sphi %s1127_s23, %s1442_s23   ;;  %s1045_s22 = sphi %s1125_s22, %s1450_s22   ;;  %s1041_s21 = sphi %s1123_s21, %s1449_s21  }
   0xa   : > { %1415 = sst [smem:[#allocation10_spill]] %s1049_s23  ;;  %s774_s9 = sadd.s32 4294967294, %s1081_s7  }
   0xb   : > { %1416 = sst [smem:[#allocation11_spill]] %s1053_s24  ;;  %s35_s10 = sadd.s32 1, %s1073_s29 }
   0xc   : > { %1417 = sst [smem:[#allocation12_spill]] %s1061_s26  ;;  %s42_s11 = sadd.s32 1, %s1077_s30 }
   0xd   : > { %1418 = sst [smem:[#allocation13_spill]] %s1073_s29  ;;  %p36_p0 = scmp.ge.s32.totalorder %s35_s10, 4 }
   0xe   : > { %1419 = sst [smem:[#allocation14_spill]] %s1077_s30  ;;  %s184_s12 = sadd.s32 1, %s1061_s26 }
   0xf   : > { %1420 = sst [smem:[#allocation15_spill]] %s1081_s7  ;;  %p194_p1 = scmp.ne.s32.totalorder %s1061_s26, %s1057_s25 }
  0x10   : > { %p1185_p2 = scmp.eq.s32.totalorder %s773_s8, 7  ;;  %s1454_s10 = smov (%p36_p0, %s35_s10), 0 }
  0x11   : > { %1422 = sst [smem:[#allocation16_spill]] %s1454_s10  ;;  %s1456_s11 = smov (!%p36_p0, %s42_s11), %s1077_s30 }
  0x12   : > { %p1194_p3 = por %p1185_p2, %p194_p1  ;;  %p200_p4 = scmp.ne.s32.totalorder %s1057_s25, %s1053_s24 }
  0x13   : > { %p44_p5 = scmp.ge.s32.totalorder %s1456_s11, 2  ;;  %p1200_p6 = scmp.eq.s32.totalorder %s774_s9, 7 }
  0x14   : > { %s208_s16 = ssub.s32 %s1073_s29, %s1454_s10  ;;  %s214_s17 = sadd.s32 1, %s1049_s23 }
  0x15   : > { %s1458_s11 = smov (%p44_p5, %s1456_s11), 0  ;;  %p1211_p7 = por %p1200_p6, %p200_p4 }
  0x16   : > { %1425 = sst [smem:[#allocation17_spill]] %s1458_s11  ;;  %p224_p8 = scmp.ne.s32.totalorder %s1049_s23, %s1045_s22 }
  0x17   : > { %s1426_s18 = scalar_select %p1211_p7, 1, 0 }
  0x18   : > { %s179_s19 = ssub.s32 %s1077_s30, %s1458_s11  ;;  %p230_p9 = scmp.ne.s32.totalorder %s1045_s22, %s1041_s21 }
  0x19   : > { %1427 = sst [smem:[#allocation18_spill]] %s1426_s18  ;;  %p182_p10 = scmp.eq.s32.totalorder %s179_s19, 0 }
  0x1a   : > { %s209_s20 = sor.u32 %s208_s16, %s179_s19  ;;  %p1223_p12 = por %p224_p8, %p1185_p2 }
  0x1b   : > { %p212_p11 = scmp.eq.s32.totalorder %s209_s20, 0  ;;  %p1235_p13 = por %p230_p9, %p1200_p6 }
  0x1c   : > { %s1228_s9 = scalar_select %p182_p10, %s1061_s26, %s184_s12  }
  0x1d   : > { %s1231_s10 = scalar_select %p212_p11, %s1049_s23, %s214_s17  }
  0x1e   : > { %1429 = sst [smem:[#allocation19_spill]] %s1228_s9  ;;  %p777_p0 = scmp.ge.s32.totalorder %s1081_s7, 1 }
  0x1f   : > { %1430 = sst [smem:[#allocation20_spill]] %s1231_s10  ;;  %p295_p1 = scmp.lt.s32.totalorder %s1081_s7, 9 }
  0x20   : > { %s1431_s29 = scalar_select %p1235_p13, 1, 0 }
  0x21   : > { %p296_p4 = pnand %p777_p0, %p295_p1 }
  0x22   : > { %1432 = sst [smem:[#allocation21_spill]] %s1431_s29  ;;  %s1405_s12 = sand.u32 (!%p296_p4), 1, %s1057_s25  }
  0x23   : > { %299 = sbr.rel (%p296_p4) target bundleno = 1074 (0x432), region = 40  ;;  %s1406_s13 = sand.u32 (!%p296_p4), 1, %s1045_s22  }
  0x24   : > { %s1245_s15 = sshll.u32 (!%p296_p4), %s1405_s12, 3  ;;  %s1249_s16 = sshll.u32 (!%p296_p4), %s1406_s13, 2 }
  0x25   : > { %p356_p2 = scmp.lt.s32.totalorder (!%p296_p4), %s1069_s28, 1  ;;  %p358_p5 = scmp.lt.s32.totalorder (!%p296_p4), %s1065_s27, 3 }
  0x26   : > { %s348_s24 = scalar_lea.vmem (!%p296_p4), [#allocation3], %s1245_s15  ;;  %s355_s7 = scalar_lea.vmem (!%p296_p4), [#allocation5], %s1249_s16 }
  0x27   : > { %p787_p6 = scmp.ne.s32.totalorder (!%p296_p4), %s1065_s27, 0 }
  0x2a   : > { %s357_s17 = scalar_select %p356_p2, %s1069_s28, 1 }
  0x2b   : > { %s359_s19 = scalar_select %p358_p5, %s1065_s27, 3 }
  0x2c   : > { %s780_s20 = sshll.u32 %s357_s17, 2  ;;  %391 = sbr.rel (%p787_p6) target bundleno = 51 (0x33), region = 44  ;;  %vm392_vm0 = vcmask (!%p787_p6), 261120   ;;  %v1083_v0 = vmov (!%p787_p6), 0.0  }
  0x2d   : > { %s364_s11 = sadd.s32 %s780_s20, %s359_s19  ;;  %s786_s30 = sshll.u32 %s359_s19, 2  ;;  %393 = vst.msk [vmem:[#allocation2] sm:$0xff] (!%p787_p6), %vm392_vm0, %v1083_v0 }
  0x2e   : > { %s1255_s9 = sshll.u32 %s364_s11, 2  ;;  %s1260_s12 = scalar_lea.vmem %s1396_s3, %s786_s30 }
  0x2f   : > { %s366_s29 = scalar_lea.vmem %s1393_s0, %s1255_s9  ;;  %s374_s17 = scalar_lea.vmem %s1394_s1, %s1255_s9 }
  0x30   : > { %s382_s11 = scalar_lea.vmem %s1395_s2, %s1255_s9 }
  0x33 PF: > { %v395_v1 = vld [vmem:[%s374_s17] sm:$0xf]  ;;  %vm401_vm1 = vcmask 1043456   ;;  %v1084_v2 = vmov 0.0   ;;  %vm1085_vm2 = vmmov 0   ;;  %vm397_vm3 = vcmask 64512  }
  0x34   : > { %806 = vmatprep.subr.bf16.mxu0 %v1084_v2  ;;  %v403_v3 = vsel %vm401_vm1, %v395_v1, 0  ;;  %808 = vmatprep.mubr.msk.bf16.mxu0 %vm1085_vm2, %v1084_v2  ;;  %v394_v4 = vld [vmem:[%s366_s29] sm:$0xf]  ;;  %vm457_vm4 = vcmask 60416   ;;  %vm555_vm5 = vcmask 261120   ;;  %p791_p8 = scmp.ne.s32.totalorder %s1065_s27, 3 }
  0x35   : > { %807 = vmatpush3.bf16.msra.mxu0 %v403_v3  ;;  %812 = vmatprep.subr.bf16.mxu1 %v1084_v2  ;;  %v396_v15 = vld [vmem:[%s382_s11] sm:$0xf] }
  0x36   : > { %814 = vmatprep.mubr.msk.bf16.mxu1 %vm1085_vm2, %v1084_v2  ;;  %818 = vmatprep.subr.bf16.mxu0 %v1084_v2  ;;  %v463_v16 = vsel %vm401_vm1, %v396_v15, 0  ;;  %v507_v17 = vld [vmem:[%s1260_s12] sm:$0xf] }
  0x37   : > { %813 = vmatpush3.bf16.msra.mxu1 %v463_v16  ;;  %v512_v18 = vsel %vm401_vm1, %v507_v17, 0  ;;  %v505_v28 = vld [vmem:[#allocation2] sm:$0xff] }
  0x38   : > { %809 = vmatmul.mubr.msk.bf16.vlgmr.msra.gmra.mrb[0].mxu0 %vm397_vm3, %v394_v4  ;;  %v792_v35 = vld [vmem:[%s1397_s4] ss:$0 sm:$0xff] (!%p791_p8) }
  0x39   : > { %820 = vmatprep.mubr.msk.bf16.mxu0 %vm1085_vm2, %v1084_v2  ;;  %819 = vmatpush3.bf16.msra.mxu0 %v512_v18 }
 0x10b   : > { %v439_v5 = vpop.f32.mrb[0].mxu0 }
 0x10c   : > { %v810_v6 = vpop.f32.mrb[1].mxu0  ;;  %v445_v7 = vsel %vm397_vm3, %v439_v5, -inf }
 0x10d   : > { %446 = vmax.xlane.f32.xlu0 %v445_v7  ;;  %v442_v8 = vpop.f32.mrb[2].mxu0 }
 0x10e   : > { %v811_v9 = vpop.f32.mrb[3].mxu0 }
 0x19a   : > { %v447_v10 = vpop.xlane.xlu0 %446 }
 0x19b   : > { %v448_v11 = vsub.f32 %v439_v5, %v447_v10 }
 0x19d   : > { %v449_v12 = vmul.f32 1.442695, %v448_v11 }
 0x19f   : > { %927 = vpow2.f32 %v449_v12 }
 0x1a9   : > { %v928_v13 = vpop.eup %927 }
 0x1aa   : > { %v451_v14 = vsel %vm397_vm3, %v928_v13, 0.0 }
 0x1ab   : > { %452 = vadd.xlane.f32.xlu0 %v451_v14 }
 0x238   : > { %v453_v19 = vpop.xlane.xlu0 %452 }
 0x239   : > { %929 = vrcp.f32 %v453_v19 }
 0x243   : > { %v930_v20 = vpop.eup %929 }
 0x244   : > { %v455_v21 = vmul.f32 %v930_v20, %v928_v13 }
 0x246   : > { %v456_v22 = vpack.c.bf16 %v455_v21, %v455_v21 }
 0x248   : > { %458 = vst.msk [vmem:[%s355_s7] sm:$0xf] %vm457_vm4, %v456_v22  ;;  %815 = vmatmul.mubr.msk.bf16.vlgmr.msra.gmra.mrb[0].mxu1 %vm397_vm3, %v456_v22 }
 0x31b   : > { %v499_v23 = vpop.f32.mrb[0].mxu1 }
 0x31c   : > { %v506_v24 = vpack.c.bf16 %v499_v23, %v499_v23  ;;  %v816_v25 = vpop.f32.mrb[1].mxu1 }
 0x31d   : > { %v502_v26 = vpop.f32.mrb[2].mxu1 }
 0x31e   : > { %v817_v27 = vpop.f32.mrb[3].mxu1  ;;  %821 = vmatmul.mubr.msk.bf16.vlgmr.msra.gmra.mrb[4].mxu0 %vm397_vm3, %v506_v24 }
 0x3ee   : > { %560 = sbr.rel (%p791_p8) target bundleno = 1023 (0x3ff), region = 48 }
 0x3f1   : > { %v548_v29 = vpop.f32.mrb[4].mxu0 }
 0x3f2   : > { %v554_v30 = vadd.f32 %v548_v29, %v505_v28  ;;  %v822_v31 = vpop.f32.mrb[5].mxu0 }
 0x3f3   : > { %v551_v32 = vpop.f32.mrb[6].mxu0 }
 0x3f4   : > { %556 = vst.msk [vmem:[#allocation2] sm:$0xff] %vm555_vm5, %v554_v30  ;;  %v823_v33 = vpop.f32.mrb[7].mxu0 }
 0x3fb   : > { %v561_v34 = vld [vmem:[#allocation2] sm:$0xff] }
 0x3fc   : > { %v569_v36 = vadd.f32 %v792_v35, %v561_v34 }
 0x3fe   : > { %570 = vst.msk [vmem:[%s348_s24] sm:$0xff] %vm555_vm5, %v569_v36 }
 0x3ff PF: > { %s795_s30 = sshll.u32 %s1069_s28, 7  ;;  %s591_s12 = sshll.u32 %s348_s24, 4  ;;  %s592_s12 = int_to_ptr.vmem [resolvable:$true] %s591_s12 }
 0x400   : > { %s1303_s9 = scalar_lea.hbm %s1398_s5, %s795_s30  ;;  %s1433_s13 = sand.u32 1, %s1057_s25  }
 0x401   : > { %s572_s17 = scalar_lea.sflag [#allocation4], %s1433_s13  ;;  %s931_s20 = scalar_lea.vmem %s592_s12, 128 }
 0x402   : > { %p932_p9 = scmp.ne.s32.totalorder %s592_s12, %s931_s20  ;;  %s1086_s19 = smov [#allocation3]  }
 0x403   : > { %s935_s11 = sshll.u32 %s1086_s19, 4  ;;  %s936_s11 = int_to_ptr.vmem [resolvable:$false] %s935_s11 }
 0x404   : > { %p933_p10 = pnand %p932_p9, %p1194_p3  ;;  %s937_s21 = scalar_lea.vmem %s936_s11, 256 }
 0x405   : > { %p938_p0 = scmp.lt.s32.totalorder %s592_s12, %s936_s11  ;;  %p939_p1 = scmp.lt.s32.totalorder %s937_s21, %s931_s20 }
 0x406   : > { %p934_p11 = pneg %p933_p10 }
 0x407   : > { %p940_p4 = por %p939_p1, %p938_p0 }
 0x409   : > { %p941_p2 = pnand %p940_p4, %p934_p11 }
 0x40b   : > { %944 = shalt.err (!%p941_p2)
}
 0x40c   : > { %s945_s24 = scalar_lea.hbm %s1303_s9, 128  ;;  %s949_s26 = scalar_lea.hbm %s1398_s5, 256 }
 0x40d   : > { %p946_p5 = scmp.ne.s32.totalorder %s1303_s9, %s945_s24  ;;  %p950_p9 = scmp.lt.u32.totalorder %s1303_s9, %s1398_s5 }
 0x40e   : > { %p951_p10 = scmp.lt.u32.totalorder %s949_s26, %s945_s24  ;;  %p953_p0 = scmp.lt.u32.totalorder %s945_s24, %s1303_s9 }
 0x40f   : > { %p947_p6 = pnand %p946_p5, %p1194_p3 }
 0x410   : > { %p952_p11 = por %p951_p10, %p950_p9 }
 0x411   : > { %p948_p8 = pneg %p947_p6 }
 0x412   : > { %p954_p1 = por %p953_p0, %p952_p11 }
 0x414   : > { %p955_p4 = pnand %p954_p1, %p948_p8 }
 0x416   : > { %958 = shalt.err (!%p955_p4)
}
 0x417   : > { %824 = dma.vmem_to_hbm [thread:$0]  (%p1194_p3), %s592_s12, 128, %s1303_s9, %s572_s17  }
 0x418   : > { %s796_s10 = sshll.u32 %s1069_s28, 2  ;;  %s607_s18 = sshll.u32 %s355_s7, 4  ;;  %s1330_s18 = int_to_ptr.vmem [resolvable:$true] %s607_s18 }
 0x419   : > { %s603_s13 = sadd.s32 %s1065_s27, %s796_s10  ;;  %s1434_s21 = sand.u32 1, %s1045_s22  }
 0x41a   : > { %s797_s20 = sshll.u32 %s603_s13, 6  ;;  %s577_s24 = scalar_lea.sflag [#allocation6], %s1434_s21 }
 0x41b   : > { %s605_s14 = scalar_lea.hbm %s1399_s6, %s797_s20  ;;  %s959_s15 = scalar_lea.vmem %s1330_s18, 64 }
 0x41c   : > { %p960_p2 = scmp.ne.s32.totalorder %s1330_s18, %s959_s15  ;;  %s1087_s28 = smov [#allocation5]  }
 0x41d   : > { %s963_s7 = sshll.u32 %s1087_s28, 4  ;;  %s964_s7 = int_to_ptr.vmem [resolvable:$false] %s963_s7 }
 0x41e   : > { %p961_p3 = pnand %p960_p2, %p1223_p12  ;;  %s965_s27 = scalar_lea.vmem %s964_s7, 128 }
 0x41f   : > { %p966_p6 = scmp.lt.s32.totalorder %s1330_s18, %s964_s7  ;;  %p967_p8 = scmp.lt.s32.totalorder %s965_s27, %s959_s15 }
 0x420   : > { %p962_p5 = pneg %p961_p3 }
 0x421   : > { %p968_p9 = por %p967_p8, %p966_p6 }
 0x423   : > { %p969_p10 = pnand %p968_p9, %p962_p5 }
 0x425   : > { %972 = shalt.err (!%p969_p10)
}
 0x426   : > { %s973_s16 = scalar_lea.hbm %s605_s14, 64  ;;  %s977_s17 = scalar_lea.hbm %s1399_s6, 512 }
 0x427   : > { %p974_p11 = scmp.ne.s32.totalorder %s605_s14, %s973_s16  ;;  %p978_p4 = scmp.lt.u32.totalorder %s605_s14, %s1399_s6 }
 0x428   : > { %p979_p2 = scmp.lt.u32.totalorder %s977_s17, %s973_s16  ;;  %p981_p13 = scmp.lt.u32.totalorder %s973_s16, %s605_s14 }
 0x429   : > { %p975_p0 = pnand %p974_p11, %p1223_p12 }
 0x42a   : > { %p980_p3 = por %p979_p2, %p978_p4 }
 0x42b   : > { %p976_p1 = pneg %p975_p0 }
 0x42c   : > { %p982_p6 = por %p981_p13, %p980_p3 }
 0x42e   : > { %p983_p5 = pnand %p982_p6, %p976_p1 }
 0x430   : > { %986 = shalt.err (!%p983_p5)
}
 0x431   : > { %825 = dma.vmem_to_hbm [thread:$0]  (%p1223_p12), %s1330_s18, 64, %s605_s14, %s577_s24  }
 0x432 PF: > { %s1435_s29 = sld [smem:[#allocation15_spill]]  ;;  %s1436_s30 = sld [smem:[#allocation11_spill]] }
 0x438   : > { %p835_p8 = scmp.ge.s32.totalorder %s1435_s29, 2  ;;  %s619_s13 = sand.u32 1, %s1436_s30  }
 0x439   : > { %s620_s20 = scalar_lea.sflag [#allocation4], %s619_s13 }
 0x43a   : > { %p829_p9 = pnand %p835_p8, %p1211_p7 }
 0x43c   : > { %1032 = dma.done.wait (!%p829_p9), %s620_s20, 128  }
 0x43d   : > { %1034 = vsyncadd (!%p829_p9), %s620_s20, 4294967168  ;;  %s1438_s19 = sld [smem:[#allocation9_spill]]  ;;  %s1439_s11 = sld [smem:[#allocation21_spill]] }
 0x443   : > { %s628_s21 = sand.u32 1, %s1438_s19   ;;  %p1440_p13 = scmp.ne.s32.totalorder %s1439_s11, 0 }
 0x444   : > { %s629_s15 = scalar_lea.sflag [#allocation6], %s628_s21 }
 0x445   : > { %p832_p10 = pnand %p835_p8, %p1440_p13 }
 0x447   : > { %1036 = dma.done.wait (!%p832_p10), %s629_s15, 64  }
 0x448   : > { %1038 = vsyncadd (!%p832_p10), %s629_s15, 4294967232  ;;  %s23_s7 = sadd.s32 1, %s1435_s29   ;;  %s1441_s8 = sld [smem:[#allocation10_spill]] }
 0x449   : > { %p20_p12 = scmp.ge.s32.totalorder %s23_s7, 10   ;;  %s1442_s23 = sld [smem:[#allocation20_spill]] }
 0x44a   : > { %s1443_s18 = sld [smem:[#allocation12_spill]]  ;;  %s1444_s26 = sld [smem:[#allocation19_spill]] }
 0x44b   : > { %s1445_s27 = sld [smem:[#allocation13_spill]]  ;;  %s1446_s28 = sld [smem:[#allocation14_spill]] }
 0x44c   : > { %s1447_s29 = sld [smem:[#allocation16_spill]]  ;;  %s1448_s30 = sld [smem:[#allocation17_spill]] }
 0x44d   : > { %s1449_s21 = smov %s1045_s22  ;;  %s1451_s24 = smov %s1057_s25 }
 0x44e   : > { %s1450_s22 = smov %s1441_s8  ;;  %22 = sbr.rel (!%p20_p12) target bundleno = 9 (0x9), region = 109 }
 0x450   : > { %s1452_s25 = smov %s1443_s18 }
 0x455   :  { %634 = vsyncpa [#allocation4], 1 }
 0x456   :  { %636 = vsyncpa [#allocation4 + $0x1], 1 }
 0x457   :  { %637 = vsyncpa [#allocation6], 1 }
 0x458   :  { %639 = vsyncpa [#allocation6 + $0x1], 1 }

</bundles_post_ra>
